<compile_context>
chip_gen: v5e
topology: v5e:2x2
jax: 0.10.0
libtpu: 0.0.40
codegen_flags: <defaults>
</compile_context>

<pallas_src>
import math

import jax
import jax.numpy as jnp
from jax.experimental import pallas as pl
from jax.experimental.pallas import tpu as pltpu

_LANE = 128
_SUBLANE = 8
_MAX_TM = 2048                      # token-tile cap (mem-bound roofline flat past ~1k rows)
_DEFAULT_VMEM = 64 * 1024 * 1024    # fallback capacity if get_tpu_info() is unavailable


def _round_up(x, m):
    return (x + m - 1) // m * m


def _vmem_budgets():
    """Generation-aware VMEM sizing from the actual per-core capacity
    (128 MiB on v5e/v6e, 64 MiB on v7x)."""
    try:
        cap = int(getattr(pltpu.get_tpu_info(), "vmem_capacity_bytes", 0)) or _DEFAULT_VMEM
    except Exception:
        cap = _DEFAULT_VMEM
    vmem_limit = int(cap * 3 // 4)   # scoped-VMEM cap passed to the compiler
    tile_budget = int(cap // 2)      # budget used when sizing tiles (headroom left)
    return vmem_limit, tile_budget


def _complex_linear_kernel(x_ref, w_ref, b_ref, y_ref):
    # One fused, lane-dense real matmul per (token, out) tile:
    #   y = x_interleaved @ W_packed + b_fused
    # f32 accumulation on the MXU, f32 bias add, cast on store.
    y_ref[...] = (
        jnp.dot(x_ref[...], w_ref[...], preferred_element_type=jnp.float32)
        + b_ref[...]
    ).astype(y_ref.dtype)


def _pack_params(params, compute_dtype):
    """Pack (Wr, br, Wi, bi) (torch nn.Linear layout, W: (out, in)) into the
    row/column-interleaved real block matrix + fused bias row; pad only the
    output (lane) axis up to a multiple of 128."""
    wr, br, wi, bi = params
    out_f, in_f = wr.shape
    if br is None:
        br = jnp.zeros((out_f,), jnp.float32)
    if bi is None:
        bi = jnp.zeros((out_f,), jnp.float32)
    wrt = wr.T.astype(jnp.float32)                       # (in, out)
    wit = wi.T.astype(jnp.float32)
    # w4[k, a, n, b] = contribution of x[..., k, a] to y[..., n, b]
    w4 = jnp.stack(
        [jnp.stack([wrt, wit], axis=-1),                 # a = 0 (real input row)
         jnp.stack([-wit, wrt], axis=-1)],               # a = 1 (imag input row)
        axis=1)                                          # (in, 2, out, 2)
    w_block = w4.reshape(2 * in_f, 2 * out_f)
    b_cat = jnp.stack([br - bi, br + bi], axis=-1).reshape(1, 2 * out_f)

    N = 2 * out_f
    N_pad = _round_up(N, _LANE)
    if N_pad != N:
        w_block = jnp.pad(w_block, ((0, 0), (0, N_pad - N)))
        b_cat = jnp.pad(b_cat, ((0, 0), (0, N_pad - N)))
    return (w_block.astype(compute_dtype), b_cat.astype(jnp.float32),
            in_f, out_f, N_pad)


def _pick_tiles(M, K, N_pad, w_itemsize, x_itemsize, y_itemsize, tile_budget):
    """Pick (tm, tn, weights_resident) so the working set fits `tile_budget`.
    Weights/bias single-buffered when fully resident; x/y tiles double-buffered."""
    bias_bytes = N_pad * 4
    w_full_bytes = K * N_pad * w_itemsize + bias_bytes
    if w_full_bytes <= tile_budget // 2:
        tn, resident, w_bytes = N_pad, True, w_full_bytes
    else:
        resident = False
        per_col = 2 * (K * w_itemsize + 4)               # double-buffered weight+bias stripe
        tn = max(((tile_budget // 2) // per_col) // _LANE * _LANE, _LANE)
        tn = min(tn, N_pad)
        while N_pad % tn:                                 # keep tn a divisor of N_pad
            tn -= _LANE
        w_bytes = 2 * (K * tn * w_itemsize + tn * 4)
    remaining = max(tile_budget - w_bytes, 0)
    per_row = 2 * (K * x_itemsize + tn * y_itemsize)      # x tile + y tile, double-buffered
    tm = max(remaining // per_row, _SUBLANE)
    tm = min(tm, _MAX_TM, _round_up(M, _SUBLANE))
    tm = max(_SUBLANE, (tm // _SUBLANE) * _SUBLANE)
    return int(tm), int(tn), resident


def complex_linear(X, params, *, compute_dtype=jnp.float32, out_dtype=None,
                   tm=None, tn=None):
    """ComplexLinear forward. X: [..., in_features, 2] -> [..., out_features, 2].

    compute_dtype=jnp.float32 matches the PyTorch module's numerics;
    compute_dtype=jnp.bfloat16 is the MXU fast path on v5e/v6e/v7x (bf16
    operands, f32 accumulation, ~2x less DMA) with a small precision cost.
    """
    w_block, b_cat, in_f, out_f, N_pad = _pack_params(params, compute_dtype)
    assert X.shape[-1] == 2 and X.shape[-2] == in_f, X.shape
    out_dtype = X.dtype if out_dtype is None else out_dtype

    lead = X.shape[:-2]
    M = int(math.prod(lead))
    K = 2 * in_f
    N = 2 * out_f

    # Free row-major view: row m = [x0_r, x0_i, x1_r, x1_i, ...]; single cast,
    # no transpose/de-interleave, no K padding (full-extent K block).
    x_flat = X.reshape(M, K).astype(compute_dtype)

    vmem_limit, tile_budget = _vmem_budgets()
    auto_tm, auto_tn, resident = _pick_tiles(
        M, K, N_pad,
        jnp.dtype(compute_dtype).itemsize,
        jnp.dtype(compute_dtype).itemsize,
        jnp.dtype(out_dtype).itemsize,
        tile_budget)
    tm = auto_tm if tm is None else tm
    tn = auto_tn if tn is None else tn
    assert tm % _SUBLANE == 0 and tn % _LANE == 0 and N_pad % tn == 0

    M_pad = _round_up(M, tm)
    if M_pad != M:
        x_flat = jnp.pad(x_flat, ((0, M_pad - M), (0, 0)))

    grid = (M_pad // tm, N_pad // tn)
    cost = pl.CostEstimate(
        flops=2 * M_pad * K * N_pad,
        transcendentals=0,
        bytes_accessed=int(
            M_pad * K * jnp.dtype(compute_dtype).itemsize
            + K * N_pad * jnp.dtype(compute_dtype).itemsize
            + N_pad * 4
            + M_pad * N_pad * jnp.dtype(out_dtype).itemsize))

    def _run(single_buffer_weights):
        # Invariant operands (packed weights / fused bias) are single-buffered
        # when fully resident; streamed (double-buffered) when N-tiled.
        w_kwargs = {}
        if single_buffer_weights and resident:
            w_kwargs = dict(pipeline_mode=pl.Buffered(1))
        return pl.pallas_call(
            _complex_linear_kernel,
            out_shape=jax.ShapeDtypeStruct((M_pad, N_pad), out_dtype),
            grid=grid,
            in_specs=[
                pl.BlockSpec((tm, K), lambda i, j: (i, 0)),              # x tile (streamed)
                pl.BlockSpec((K, tn), lambda i, j: (0, j), **w_kwargs),  # packed weights
                pl.BlockSpec((1, tn), lambda i, j: (0, j), **w_kwargs),  # fused bias row
            ],
            out_specs=pl.BlockSpec((tm, tn), lambda i, j: (i, j)),
            compiler_params=pltpu.CompilerParams(
                dimension_semantics=("parallel", "parallel"),
                vmem_limit_bytes=vmem_limit,
            ),
            cost_estimate=cost,
        )(x_flat, w_block, b_cat)

    try:
        y_pad = _run(True)
    except Exception:
        # pipeline_mode=pl.Buffered(1) unsupported on this jax version: fall back
        # to default double-buffering of the invariant operands.
        y_pad = _run(False)

    # Columns already interleaved [r0, i0, r1, i1, ...]: slice pad + free reshape.
    return y_pad[:M, :N].reshape(*lead, out_f, 2)


def _init_params(key, in_features, out_features):
    """torch.nn.Linear-style init: U(+-1/sqrt(fan_in)); W stored as (out, in)."""
    ks = jax.random.split(key, 4)
    bound = 1.0 / math.sqrt(in_features)
    wr = jax.random.uniform(ks[0], (out_features, in_features), jnp.float32, -bound, bound)
    br = jax.random.uniform(ks[1], (out_features,), jnp.float32, -bound, bound)
    wi = jax.random.uniform(ks[2], (out_features, in_features), jnp.float32, -bound, bound)
    bi = jax.random.uniform(ks[3], (out_features,), jnp.float32, -bound, bound)
    return (wr, br, wi, bi)


def _reference(X, params):
    """Pure-JAX reference matching the PyTorch forward exactly."""
    wr, br, wi, bi = params
    x_r, x_i = X[..., 0], X[..., 1]
    f_r = lambda t: t @ wr.T + br
    f_i = lambda t: t @ wi.T + bi
    return jnp.stack((f_r(x_r) - f_i(x_i), f_r(x_i) + f_i(x_r)), axis=-1)


if __name__ == "__main__":
    batch, seq = 2, 8
    in_features, out_features = 32, 64

    key = jax.random.PRNGKey(0)
    k_x, k_p = jax.random.split(key)
    X = jax.random.normal(k_x, (batch, seq, in_features, 2), dtype=jnp.float32)
    params = _init_params(k_p, in_features, out_features)

    Y_ref = _reference(X, params)

    # f32 operand path: matches the PyTorch module's numerics.
    Y = jax.block_until_ready(complex_linear(X, params, compute_dtype=jnp.float32))
    assert Y.shape == (batch, seq, out_features, 2)
    assert jnp.allclose(Y, Y_ref, atol=1e-5, rtol=1e-5), "f32 mismatch vs reference"

    # bf16 operand fast path (MXU-native on all generations), f32 accumulation.
    # Looser tolerance is the intentional precision trade-off vs the f32 reference.
    Y16 = jax.block_until_ready(complex_linear(X, params, compute_dtype=jnp.bfloat16))
    assert jnp.allclose(Y16, Y_ref, atol=5e-2, rtol=5e-2), "bf16 mismatch vs reference"

    print("KERNEL_OK")
</pallas_src>

<mosaic_0001>
module attributes {stable_mosaic.version = 11 : i64} {
  func.func @_complex_linear_kernel(%arg0: i32, %arg1: i32, %arg2: memref<16x64xf32, #tpu.memory_space<vmem>>, %arg3: memref<64x128xf32, #tpu.memory_space<vmem>>, %arg4: memref<1x128xf32, #tpu.memory_space<vmem>>, %arg5: memref<16x128xf32, #tpu.memory_space<vmem>>) attributes {dimension_semantics = [#tpu.dimension_semantics<parallel>, #tpu.dimension_semantics<parallel>], iteration_bounds = array<i64: 1, 1>, scalar_prefetch = 0 : i64, scratch_operands = 0 : i64, tpu.core_type = #tpu.core_type<tc>, window_params = [{transform_indices = @transform_0, window_bounds = array<i64: 16, 64>}, {pipeline_mode = #tpu.pipeline_mode<synchronous>, transform_indices = @transform_1, window_bounds = array<i64: 64, 128>}, {pipeline_mode = #tpu.pipeline_mode<synchronous>, transform_indices = @transform_2, window_bounds = array<i64: 1, 128>}, {transform_indices = @transform_3, window_bounds = array<i64: 16, 128>}]} {
    %c0 = arith.constant 0 : index
    %c0_0 = arith.constant 0 : index
    %0 = vector.load %arg2[%c0, %c0_0] : memref<16x64xf32, #tpu.memory_space<vmem>>, vector<16x64xf32>
    %c0_1 = arith.constant 0 : index
    %c0_2 = arith.constant 0 : index
    %1 = vector.load %arg3[%c0_1, %c0_2] : memref<64x128xf32, #tpu.memory_space<vmem>>, vector<64x128xf32>
    %cst = arith.constant dense<0.000000e+00> : vector<16x128xf32>
    %2 = tpu.matmul %0, %1, %cst {dimension_numbers = #tpu.dot_dimension_numbers<[1], [0], [0], [1], [0, 0, 1, 1], [], []>} : vector<16x64xf32>, vector<64x128xf32>, vector<16x128xf32> -> vector<16x128xf32>
    %c0_3 = arith.constant 0 : index
    %c0_4 = arith.constant 0 : index
    %3 = vector.load %arg4[%c0_3, %c0_4] : memref<1x128xf32, #tpu.memory_space<vmem>>, vector<1x128xf32>
    %4 = vector.broadcast %3 : vector<1x128xf32> to vector<16x128xf32>
    %5 = arith.addf %2, %4 : vector<16x128xf32>
    %c0_5 = arith.constant 0 : index
    %c0_6 = arith.constant 0 : index
    %6 = vector.load %arg5[%c0_5, %c0_6] : memref<16x128xf32, #tpu.memory_space<vmem>>, vector<16x128xf32>
    tpu.vector_store %arg5[%c0_5, %c0_6], %5 {strides = array<i32>} : memref<16x128xf32, #tpu.memory_space<vmem>>, vector<16x128xf32>,
    return
  }
  func.func @transform_0(%arg0: i32, %arg1: i32) -> (i32, i32) {
    %c0_i32 = arith.constant 0 : i32
    %c0_i32_0 = arith.constant 0 : i32
    return %arg0, %c0_i32 : i32, i32
  }
  func.func @transform_1(%arg0: i32, %arg1: i32) -> (i32, i32) {
    %c0_i32 = arith.constant 0 : i32
    %c0_i32_0 = arith.constant 0 : i32
    return %c0_i32, %arg1 : i32, i32
  }
  func.func @transform_2(%arg0: i32, %arg1: i32) -> (i32, i32) {
    %c0_i32 = arith.constant 0 : i32
    %c0_i32_0 = arith.constant 0 : i32
    return %c0_i32, %arg1 : i32, i32
  }
  func.func @transform_3(%arg0: i32, %arg1: i32) -> (i32, i32) {
    %c0_i32 = arith.constant 0 : i32
    return %arg0, %arg1 : i32, i32
  }
}

module attributes {stable_mosaic.version = 11 : i64} {
  func.func @_complex_linear_kernel(%arg0: i32, %arg1: i32, %arg2: memref<16x64xf32, #tpu.memory_space<vmem>>, %arg3: memref<64x128xf32, #tpu.memory_space<vmem>>, %arg4: memref<1x128xf32, #tpu.memory_space<vmem>>, %arg5: memref<16x128xf32, #tpu.memory_space<vmem>>) attributes {dimension_semantics = [#tpu.dimension_semantics<parallel>, #tpu.dimension_semantics<parallel>], iteration_bounds = array<i64: 1, 1>, scalar_prefetch = 0 : i64, scratch_operands = 0 : i64, tpu.core_type = #tpu.core_type<tc>, window_params = [{transform_indices = @transform_0, window_bounds = array<i64: 16, 64>}, {transform_indices = @transform_1, window_bounds = array<i64: 64, 128>}, {transform_indices = @transform_2, window_bounds = array<i64: 1, 128>}, {transform_indices = @transform_3, window_bounds = array<i64: 16, 128>}]} {
    %c0 = arith.constant 0 : index
    %c0_0 = arith.constant 0 : index
    %0 = vector.load %arg2[%c0, %c0_0] : memref<16x64xf32, #tpu.memory_space<vmem>>, vector<16x64xf32>
    %c0_1 = arith.constant 0 : index
    %c0_2 = arith.constant 0 : index
    %1 = vector.load %arg3[%c0_1, %c0_2] : memref<64x128xf32, #tpu.memory_space<vmem>>, vector<64x128xf32>
    %cst = arith.constant dense<0.000000e+00> : vector<16x128xf32>
    %2 = tpu.matmul %0, %1, %cst {dimension_numbers = #tpu.dot_dimension_numbers<[1], [0], [0], [1], [0, 0, 1, 1], [], []>} : vector<16x64xf32>, vector<64x128xf32>, vector<16x128xf32> -> vector<16x128xf32>
    %c0_3 = arith.constant 0 : index
    %c0_4 = arith.constant 0 : index
    %3 = vector.load %arg4[%c0_3, %c0_4] : memref<1x128xf32, #tpu.memory_space<vmem>>, vector<1x128xf32>
    %4 = vector.broadcast %3 : vector<1x128xf32> to vector<16x128xf32>
    %5 = arith.addf %2, %4 : vector<16x128xf32>
    %c0_5 = arith.constant 0 : index
    %c0_6 = arith.constant 0 : index
    %6 = vector.load %arg5[%c0_5, %c0_6] : memref<16x128xf32, #tpu.memory_space<vmem>>, vector<16x128xf32>
    tpu.vector_store %arg5[%c0_5, %c0_6], %5 {strides = array<i32>} : memref<16x128xf32, #tpu.memory_space<vmem>>, vector<16x128xf32>,
    return
  }
  func.func @transform_0(%arg0: i32, %arg1: i32) -> (i32, i32) {
    %c0_i32 = arith.constant 0 : i32
    %c0_i32_0 = arith.constant 0 : i32
    return %arg0, %c0_i32 : i32, i32
  }
  func.func @transform_1(%arg0: i32, %arg1: i32) -> (i32, i32) {
    %c0_i32 = arith.constant 0 : i32
    %c0_i32_0 = arith.constant 0 : i32
    return %c0_i32, %arg1 : i32, i32
  }
  func.func @transform_2(%arg0: i32, %arg1: i32) -> (i32, i32) {
    %c0_i32 = arith.constant 0 : i32
    %c0_i32_0 = arith.constant 0 : i32
    return %c0_i32, %arg1 : i32, i32
  }
  func.func @transform_3(%arg0: i32, %arg1: i32) -> (i32, i32) {
    %c0_i32 = arith.constant 0 : i32
    return %arg0, %arg1 : i32, i32
  }
}

</mosaic_0001>

<bundles_post_ra>
// kernel: tpu_custom_call.1
= control target key start
LH: loop header
LB: loop body
LE: loop exit
PB: predicated region body
PF: predicated region fallthrough
CT: control target
= control target key end

     0   :  { %8 = vsyncpa [#allocation3], 0  ;;  %s253_s0 = inlined_call_operand.hbm [shape: f32[16,64], index: 0, kind: input, shape index: {}]   ;;  %s254_s1 = inlined_call_operand.hbm [shape: f32[64,128], index: 1, kind: input, shape index: {}]   ;;  %s255_s2 = inlined_call_operand.vmem [shape: f32[1,128], index: 2, kind: input, shape index: {}]   ;;  %s256_s3 = inlined_call_operand.hbm [shape: f32[16,128], index: 3, kind: output, shape index: {}]  }
   0x1   :  { %9 = vsyncpa [#allocation6], 0 }
   0x2   :  { %10 = vsyncpa [#allocation4], 0  ;;  %s15_s14 = sshll.u32 %s253_s0, 4  ;;  %s207_s15 = smov [#allocation2]   ;;  %s16_s14 = int_to_ptr.hbm [resolvable:$true] %s15_s14 }
   0x3   :  { %s17_s16 = sshll.u32 %s207_s15, 4  ;;  %s28_s19 = sshll.u32 %s254_s1, 4  ;;  %s18_s16 = int_to_ptr.vmem [resolvable:$true] %s17_s16  ;;  %s29_s19 = int_to_ptr.hbm [resolvable:$true] %s28_s19 }
   0x4   :  { %s208_s20 = smov 128   ;;  %s209_s21 = smov 8  }
   0x5   :  { %23 = dma.hbm_to_vmem [thread:$0]  %s16_s14, 256, %s18_s16, [#allocation3], %s208_s20, %s208_s20, %s209_s21  }
   0x6   :  { %s210_s22 = smov [#allocation5]  }
   0x7   :  { %s30_s23 = sshll.u32 %s210_s22, 4  ;;  %s31_s23 = int_to_ptr.vmem [resolvable:$true] %s30_s23 }
   0x8   :  { %36 = dma.hbm_to_vmem [thread:$0]  %s29_s19, 1024, %s31_s23, [#allocation6], %s208_s20, %s208_s20, %s209_s21  }
   0x9   :  { %201 = dma.done.wait [#allocation3], 256  }
   0xa   :  { %202 = vsyncadd [#allocation3], 4294967040 }
   0xb   :  { %203 = dma.done.wait [#allocation6], 1024  }
   0xc   :  { %204 = vsyncadd [#allocation6], 4294966272  ;;  %v56_v0 = vld [vmem:[#allocation5 + $0x38] sm:$0xff]  ;;  %v55_v1 = vld [vmem:[#allocation5 + $0x30] sm:$0xff]  ;;  %vm61_vm0 = vcmask 523264   ;;  %s211_s24 = smov [#allocation7]  }
   0xd   :  { %76 = vmatpush.msra.mxu0 %v56_v0  ;;  %115 = vmatpush.msra.mxu1 %v56_v0  ;;  %v54_v2 = vld [vmem:[#allocation5 + $0x28] sm:$0xff]  ;;  %v53_v3 = vld [vmem:[#allocation5 + $0x20] sm:$0xff]  ;;  %v52_v4 = vld [vmem:[#allocation5 + $0x18] sm:$0xff]  ;;  %s97_s25 = sshll.u32 %s211_s24, 4  ;;  %s99_s28 = sshll.u32 %s256_s3, 4  ;;  %s98_s25 = int_to_ptr.vmem [resolvable:$true] %s97_s25  ;;  %s100_s28 = int_to_ptr.hbm [resolvable:$true] %s99_s28 }
   0xe   :  { %v51_v5 = vld [vmem:[#allocation5 + $0x10] sm:$0xff]  ;;  %v50_v6 = vld [vmem:[#allocation5 + $0x8] sm:$0xff]  ;;  %v49_v7 = vld [vmem:[#allocation5] sm:$0xff] }
   0xf   :  { %77 = vmatpush.msra.mxu0 %v55_v1  ;;  %116 = vmatpush.msra.mxu1 %v55_v1  ;;  %v47_v8 = vld [vmem:[#allocation2] sm:$0xff]  ;;  %v48_v9 = vld [vmem:[#allocation2 + $0x8] sm:$0xff] }
  0x10   :  { %v128_v10 = vld [vmem:[%s255_s2] ss:$0 sm:$0xff] }
  0x11   :  { %78 = vmatpush.msra.mxu0 %v54_v2  ;;  %117 = vmatpush.msra.mxu1 %v54_v2 }
  0x13   :  { %79 = vmatpush.msra.mxu0 %v53_v3  ;;  %118 = vmatpush.msra.mxu1 %v53_v3 }
  0x15   :  { %80 = vmatpush.msra.mxu0 %v52_v4  ;;  %119 = vmatpush.msra.mxu1 %v52_v4 }
  0x17   :  { %81 = vmatpush.msra.mxu0 %v51_v5  ;;  %120 = vmatpush.msra.mxu1 %v51_v5 }
  0x19   :  { %82 = vmatpush.msra.mxu0 %v50_v6  ;;  %121 = vmatpush.msra.mxu1 %v50_v6 }
  0x1b   :  { %83 = vmatpush.msra.mxu0 %v49_v7  ;;  %122 = vmatpush.msra.mxu1 %v49_v7 }
  0x1c   :  { %113 = vmatmul.msk.f32.vlgmr.msra.gmra.mxu0 %vm61_vm0, %v47_v8  ;;  %114 = vmatmul.msk.f32.vlgmr.msra.gmra.mxu1 %vm61_vm0, %v48_v9 }
  0x99   :  { %v85_v11 = vpop.f32.mrf.mxu0  ;;  %v88_v12 = vpop.f32.mrf.mxu1 }
  0x9a   :  { %v86_v13 = vadd.f32 %v128_v10, %v85_v11  ;;  %v89_v14 = vadd.f32 %v128_v10, %v88_v12 }
  0x9c   :  { %91 = vst [vmem:[#allocation7] sm:$0xff] %v86_v13 }
  0x9d   :  { %92 = vst [vmem:[#allocation7 + $0x8] sm:$0xff] %v89_v14 }
  0x9e   :  { %105 = dma.vmem_to_hbm [thread:$0]  %s98_s25, 256, %s100_s28, [#allocation4], %s208_s20, %s208_s20, %s209_s21  }
  0x9f   :  { %205 = dma.done.wait [#allocation4], 256  }
  0xa0   :  { %206 = vsyncadd [#allocation4], 4294967040 }
  0xa1   :  { %110 = vsyncpa [#allocation3], 1 }
  0xa2   :  { %111 = vsyncpa [#allocation6], 1 }
  0xa3   :  { %112 = vsyncpa [#allocation4], 1 }

// kernel: tpu_custom_call.1
= control target key start
LH: loop header
LB: loop body
LE: loop exit
PB: predicated region body
PF: predicated region fallthrough
CT: control target
= control target key end

     0   :  { %8 = vsyncpa [#allocation3], 0  ;;  %s253_s0 = inlined_call_operand.hbm [shape: f32[16,64], index: 0, kind: input, shape index: {}]   ;;  %s254_s1 = inlined_call_operand.hbm [shape: f32[64,128], index: 1, kind: input, shape index: {}]   ;;  %s255_s2 = inlined_call_operand.vmem [shape: f32[1,128], index: 2, kind: input, shape index: {}]   ;;  %s256_s3 = inlined_call_operand.hbm [shape: f32[16,128], index: 3, kind: output, shape index: {}]  }
   0x1   :  { %9 = vsyncpa [#allocation6], 0 }
   0x2   :  { %10 = vsyncpa [#allocation4], 0  ;;  %s15_s14 = sshll.u32 %s253_s0, 4  ;;  %s207_s15 = smov [#allocation2]   ;;  %s16_s14 = int_to_ptr.hbm [resolvable:$true] %s15_s14 }
   0x3   :  { %s17_s16 = sshll.u32 %s207_s15, 4  ;;  %s28_s19 = sshll.u32 %s254_s1, 4  ;;  %s18_s16 = int_to_ptr.vmem [resolvable:$true] %s17_s16  ;;  %s29_s19 = int_to_ptr.hbm [resolvable:$true] %s28_s19 }
   0x4   :  { %s208_s20 = smov 128   ;;  %s209_s21 = smov 8  }
   0x5   :  { %23 = dma.hbm_to_vmem [thread:$0]  %s16_s14, 256, %s18_s16, [#allocation3], %s208_s20, %s208_s20, %s209_s21  }
   0x6   :  { %s210_s22 = smov [#allocation5]  }
   0x7   :  { %s30_s23 = sshll.u32 %s210_s22, 4  ;;  %s31_s23 = int_to_ptr.vmem [resolvable:$true] %s30_s23 }
   0x8   :  { %36 = dma.hbm_to_vmem [thread:$0]  %s29_s19, 1024, %s31_s23, [#allocation6], %s208_s20, %s208_s20, %s209_s21  }
   0x9   :  { %201 = dma.done.wait [#allocation3], 256  }
   0xa   :  { %202 = vsyncadd [#allocation3], 4294967040 }
   0xb   :  { %203 = dma.done.wait [#allocation6], 1024  }
   0xc   :  { %204 = vsyncadd [#allocation6], 4294966272  ;;  %v56_v0 = vld [vmem:[#allocation5 + $0x38] sm:$0xff]  ;;  %v55_v1 = vld [vmem:[#allocation5 + $0x30] sm:$0xff]  ;;  %vm61_vm0 = vcmask 523264   ;;  %s211_s24 = smov [#allocation7]  }
   0xd   :  { %76 = vmatpush.msra.mxu0 %v56_v0  ;;  %115 = vmatpush.msra.mxu1 %v56_v0  ;;  %v54_v2 = vld [vmem:[#allocation5 + $0x28] sm:$0xff]  ;;  %v53_v3 = vld [vmem:[#allocation5 + $0x20] sm:$0xff]  ;;  %v52_v4 = vld [vmem:[#allocation5 + $0x18] sm:$0xff]  ;;  %s97_s25 = sshll.u32 %s211_s24, 4  ;;  %s99_s28 = sshll.u32 %s256_s3, 4  ;;  %s98_s25 = int_to_ptr.vmem [resolvable:$true] %s97_s25  ;;  %s100_s28 = int_to_ptr.hbm [resolvable:$true] %s99_s28 }
   0xe   :  { %v51_v5 = vld [vmem:[#allocation5 + $0x10] sm:$0xff]  ;;  %v50_v6 = vld [vmem:[#allocation5 + $0x8] sm:$0xff]  ;;  %v49_v7 = vld [vmem:[#allocation5] sm:$0xff] }
   0xf   :  { %77 = vmatpush.msra.mxu0 %v55_v1  ;;  %116 = vmatpush.msra.mxu1 %v55_v1  ;;  %v47_v8 = vld [vmem:[#allocation2] sm:$0xff]  ;;  %v48_v9 = vld [vmem:[#allocation2 + $0x8] sm:$0xff] }
  0x10   :  { %v128_v10 = vld [vmem:[%s255_s2] ss:$0 sm:$0xff] }
  0x11   :  { %78 = vmatpush.msra.mxu0 %v54_v2  ;;  %117 = vmatpush.msra.mxu1 %v54_v2 }
  0x13   :  { %79 = vmatpush.msra.mxu0 %v53_v3  ;;  %118 = vmatpush.msra.mxu1 %v53_v3 }
  0x15   :  { %80 = vmatpush.msra.mxu0 %v52_v4  ;;  %119 = vmatpush.msra.mxu1 %v52_v4 }
  0x17   :  { %81 = vmatpush.msra.mxu0 %v51_v5  ;;  %120 = vmatpush.msra.mxu1 %v51_v5 }
  0x19   :  { %82 = vmatpush.msra.mxu0 %v50_v6  ;;  %121 = vmatpush.msra.mxu1 %v50_v6 }
  0x1b   :  { %83 = vmatpush.msra.mxu0 %v49_v7  ;;  %122 = vmatpush.msra.mxu1 %v49_v7 }
  0x1c   :  { %113 = vmatmul.msk.f32.vlgmr.msra.gmra.mxu0 %vm61_vm0, %v47_v8  ;;  %114 = vmatmul.msk.f32.vlgmr.msra.gmra.mxu1 %vm61_vm0, %v48_v9 }
  0x99   :  { %v85_v11 = vpop.f32.mrf.mxu0  ;;  %v88_v12 = vpop.f32.mrf.mxu1 }
  0x9a   :  { %v86_v13 = vadd.f32 %v128_v10, %v85_v11  ;;  %v89_v14 = vadd.f32 %v128_v10, %v88_v12 }
  0x9c   :  { %91 = vst [vmem:[#allocation7] sm:$0xff] %v86_v13 }
  0x9d   :  { %92 = vst [vmem:[#allocation7 + $0x8] sm:$0xff] %v89_v14 }
  0x9e   :  { %105 = dma.vmem_to_hbm [thread:$0]  %s98_s25, 256, %s100_s28, [#allocation4], %s208_s20, %s208_s20, %s209_s21  }
  0x9f   :  { %205 = dma.done.wait [#allocation4], 256  }
  0xa0   :  { %206 = vsyncadd [#allocation4], 4294967040 }
  0xa1   :  { %110 = vsyncpa [#allocation3], 1 }
  0xa2   :  { %111 = vsyncpa [#allocation6], 1 }
  0xa3   :  { %112 = vsyncpa [#allocation4], 1 }

</bundles_post_ra>
